<compile_context>
chip_gen: v7x
topology: tpu7x:2x2x1
jax: 0.10.0
libtpu: 0.0.40
codegen_flags: <defaults>
</compile_context>

<pallas_src>
import functools
from itertools import product

import numpy as np
import jax
import jax.numpy as jnp
from jax.experimental import pallas as pl
from jax.experimental.pallas import tpu as pltpu

TM = 512                                 # row tile (review: 128 -> 512)
GEMM_VMEM_LIMIT = 32 * 1024 * 1024       # > v5e 16 MiB default scoped limit, << every gen's VMEM
FUSED_VMEM_LIMIT = 48 * 1024 * 1024      # sized for v7x 64 MiB/TC (per core; v5e/v6e have 128 MiB)
FUSED_TABLE_BYTES = 24 * 1024 * 1024     # max resident f32 feature-table bytes for in-kernel gather
BN_EPS = 1e-4                            # spconv UNets typically use norm_fn(eps=1e-4, momentum=0.1)


def pad_to(n, m):
    return ((n + m - 1) // m) * m


def _pick_rows(n):
    """Largest row-tile (multiple of 8, <= 1024) dividing n; else the full extent."""
    for t in (1024, 512, 256, 128, 64, 32, 16, 8):
        if n % t == 0:
            return t
    return n


# ----------------------------------------------------------------------------
# Pallas kernels
# ----------------------------------------------------------------------------
def _stats_kernel(nv_ref, x_ref, s_ref, q_ref, *, c):
    # Per-tile column sums / sums-of-squares over the first n_valid logical rows.
    # Works on either the (M, C) view or the lane-dense (M*C/128, 128) view:
    # the mask compares the flattened element index against n_valid * C.
    t, l = x_ref.shape
    base = pl.program_id(0) * t
    elem = (jax.lax.broadcasted_iota(jnp.int32, (t, l), 0) + base) * l + \
        jax.lax.broadcasted_iota(jnp.int32, (t, l), 1)
    x = jnp.where(elem < nv_ref[0] * c, x_ref[...], 0.0)
    s_ref[...] = jnp.sum(x, axis=0, keepdims=True)[None]
    q_ref[...] = jnp.sum(x * x, axis=0, keepdims=True)[None]


def _bn_relu_kernel(nv_ref, x_ref, sc_ref, sh_ref, o_ref, *, c):
    # y = relu(x * scale + shift); rows >= n_valid forced to exactly 0 so the
    # zero-row convention survives BN's shift. Lane-dense friendly (see above).
    t, l = x_ref.shape
    base = pl.program_id(0) * t
    elem = (jax.lax.broadcasted_iota(jnp.int32, (t, l), 0) + base) * l + \
        jax.lax.broadcasted_iota(jnp.int32, (t, l), 1)
    y = x_ref[...] * sc_ref[...] + sh_ref[...]
    y = jnp.where(elem < nv_ref[0] * c, jnp.maximum(y, 0.0), 0.0)
    o_ref[...] = y.astype(o_ref.dtype)


def _gemm_kernel(a_ref, w_ref, o_ref, s_ref, q_ref):
    out = jnp.dot(a_ref[...].astype(jnp.bfloat16), w_ref[...],
                  preferred_element_type=jnp.float32)
    o_ref[...] = out
    s_ref[...] = jnp.sum(out, axis=0, keepdims=True)[None]
    q_ref[...] = jnp.sum(out * out, axis=0, keepdims=True)[None]


def _gemm_res_kernel(a_ref, w_ref, r_ref, o_ref, s_ref, q_ref):
    out = r_ref[...] + jnp.dot(a_ref[...].astype(jnp.bfloat16), w_ref[...],
                               preferred_element_type=jnp.float32)
    o_ref[...] = out
    s_ref[...] = jnp.sum(out, axis=0, keepdims=True)[None]
    q_ref[...] = jnp.sum(out * out, axis=0, keepdims=True)[None]


def _make_fused_subm_kernel(n_offsets, has_res):
    """Fused SubMConv3d(k=3) tile kernel:
    in-kernel row gather from the VMEM-resident feature table + BN + ReLU +
    per-offset MXU dot + optional residual + BN-stats epilogue."""
    def kernel(nv_ref, tbl_ref, idx_ref, sc_ref, sh_ref, w_ref, *rest):
        if has_res:
            r_ref, o_ref, s_ref, q_ref = rest
        else:
            o_ref, s_ref, q_ref = rest
        nv = nv_ref[0]
        tbl = tbl_ref[...]                        # (M_table, Cin) f32, resident across the grid
        idx = idx_ref[...]                        # (TM, K) int32, streamed per tile
        sc = sc_ref[...]                          # (1, Cin)
        sh = sh_ref[...]
        acc = r_ref[...] if has_res else jnp.zeros(o_ref.shape, jnp.float32)
        for k in range(n_offsets):                # statically unrolled over the 27 kernel offsets
            ik = idx[:, k]
            rows = jnp.take(tbl, ik, axis=0, mode="promise_in_bounds")
            a = jnp.maximum(rows * sc + sh, 0.0)  # BN + ReLU on the gathered rows
            a = jnp.where(idx[:, k:k + 1] < nv, a, 0.0).astype(jnp.bfloat16)
            acc = acc + jnp.dot(a, w_ref[k], preferred_element_type=jnp.float32)
        o_ref[...] = acc
        s_ref[...] = jnp.sum(acc, axis=0, keepdims=True)[None]
        q_ref[...] = jnp.sum(acc * acc, axis=0, keepdims=True)[None]
    return kernel


# ----------------------------------------------------------------------------
# Kernel wrappers
# ----------------------------------------------------------------------------
_SMEM_SPEC = pl.BlockSpec(memory_space=pltpu.MemorySpace.SMEM)


def _lane_dense_view(x):
    """(M, C) -> lane-dense (M*C/128, 128) view when C divides 128 (C=16/32/...)."""
    M, C = x.shape
    if (M * C) % 128 == 0 and 128 % C == 0:
        return x.reshape(M * C // 128, 128), 128
    return x, C


@jax.jit
def bn_stats(x, nv_arr):
    """Per-channel sum / sum-of-squares over the first n_valid rows (runtime n_valid)."""
    M, C = x.shape
    xv, L = _lane_dense_view(x)
    R = xv.shape[0]
    T = _pick_rows(R)
    n_tiles = R // T
    s, q = pl.pallas_call(
        functools.partial(_stats_kernel, c=C),
        out_shape=(jax.ShapeDtypeStruct((n_tiles, 1, L), jnp.float32),
                   jax.ShapeDtypeStruct((n_tiles, 1, L), jnp.float32)),
        grid=(n_tiles,),
        in_specs=[_SMEM_SPEC,
                  pl.BlockSpec((T, L), lambda i: (i, 0))],
        out_specs=(pl.BlockSpec((1, 1, L), lambda i: (i, 0, 0)),
                   pl.BlockSpec((1, 1, L), lambda i: (i, 0, 0))),
        compiler_params=pltpu.CompilerParams(
            dimension_semantics=("parallel",),
            vmem_limit_bytes=GEMM_VMEM_LIMIT),
    )(nv_arr, xv)
    s = jnp.sum(s, axis=(0, 1))
    q = jnp.sum(q, axis=(0, 1))
    if L != C:                                   # fold the 128//C lane groups back to C channels
        s = s.reshape(L // C, C).sum(0)
        q = q.reshape(L // C, C).sum(0)
    return s, q


def bn_scale_shift(stats, gamma, beta, nv_arr, eps=BN_EPS):
    """Training-mode BatchNorm1d folded into per-channel scale/shift (batch stats)."""
    s, q = stats
    n = nv_arr.astype(jnp.float32)[0]
    mean = s / n
    var = jnp.maximum(q / n - mean * mean, 0.0)
    inv = gamma / jnp.sqrt(var + eps)
    return inv[None, :].astype(jnp.float32), (beta - mean * inv)[None, :].astype(jnp.float32)


@jax.jit
def bn_relu_apply(x, scale, shift, nv_arr):
    """y = relu(x*scale + shift), rows >= n_valid zeroed; bf16 output (halves glue traffic)."""
    M, C = x.shape
    xv, L = _lane_dense_view(x)
    if L != C:
        scv = jnp.tile(scale, (1, L // C))
        shv = jnp.tile(shift, (1, L // C))
    else:
        scv, shv = scale, shift
    R = xv.shape[0]
    T = _pick_rows(R)
    y = pl.pallas_call(
        functools.partial(_bn_relu_kernel, c=C),
        out_shape=jax.ShapeDtypeStruct((R, L), jnp.bfloat16),
        grid=(R // T,),
        in_specs=[_SMEM_SPEC,
                  pl.BlockSpec((T, L), lambda i: (i, 0)),
                  pl.BlockSpec((1, L), lambda i: (0, 0)),
                  pl.BlockSpec((1, L), lambda i: (0, 0))],
        out_specs=pl.BlockSpec((T, L), lambda i: (i, 0)),
        compiler_params=pltpu.CompilerParams(
            dimension_semantics=("parallel",),
            vmem_limit_bytes=GEMM_VMEM_LIMIT),
    )(nv_arr, xv, scv, shv)
    return y.reshape(M, C)


@jax.jit
def gemm_stats(a, w2d, residual=None):
    """out = a @ w2d (+ residual), plus per-channel sum / sum-of-squares of the output
    (BN-stats epilogue, so the consumer's BatchNorm needs no extra pass)."""
    M, Kc = a.shape
    Cout = w2d.shape[1]
    n_tiles = M // TM
    in_specs = [pl.BlockSpec((TM, Kc), lambda i: (i, 0)),
                pl.BlockSpec((Kc, Cout), lambda i: (0, 0))]    # weights VMEM-resident
    args = [a, w2d]
    kernel = _gemm_kernel
    if residual is not None:
        kernel = _gemm_res_kernel
        in_specs.append(pl.BlockSpec((TM, Cout), lambda i: (i, 0)))
        args.append(residual)
    out, s, q = pl.pallas_call(
        kernel,
        out_shape=(jax.ShapeDtypeStruct((M, Cout), jnp.float32),
                   jax.ShapeDtypeStruct((n_tiles, 1, Cout), jnp.float32),
                   jax.ShapeDtypeStruct((n_tiles, 1, Cout), jnp.float32)),
        grid=(n_tiles,),
        in_specs=in_specs,
        out_specs=(pl.BlockSpec((TM, Cout), lambda i: (i, 0)),
                   pl.BlockSpec((1, 1, Cout), lambda i: (i, 0, 0)),
                   pl.BlockSpec((1, 1, Cout), lambda i: (i, 0, 0))),
        compiler_params=pltpu.CompilerParams(
            dimension_semantics=("parallel",),
            vmem_limit_bytes=GEMM_VMEM_LIMIT),
    )(*args)
    return out, (jnp.sum(s, axis=(0, 1)), jnp.sum(q, axis=(0, 1)))


@jax.jit
def _fused_subm_call(nv_arr, x, nbr_idx, scale, shift, w3, residual=None):
    """Fused BN+ReLU+SubMConv3d(k=3)(+residual)+stats with in-kernel neighbour gather."""
    M, Cin = x.shape
    K = nbr_idx.shape[1]
    Cout = w3.shape[2]
    n_tiles = M // TM
    has_res = residual is not None
    kernel = _make_fused_subm_kernel(K, has_res)
    in_specs = [_SMEM_SPEC,                                    # n_valid (runtime scalar)
                pl.BlockSpec((M, Cin), lambda i: (0, 0)),      # resident f32 feature table
                pl.BlockSpec((TM, K), lambda i: (i, 0)),       # streamed neighbour indices
                pl.BlockSpec((1, Cin), lambda i: (0, 0)),      # BN scale
                pl.BlockSpec((1, Cin), lambda i: (0, 0)),      # BN shift
                pl.BlockSpec((K, Cin, Cout), lambda i: (0, 0, 0))]  # resident bf16 weights
    args = [nv_arr, x, nbr_idx, scale, shift, w3]
    if has_res:
        in_specs.append(pl.BlockSpec((TM, Cout), lambda i: (i, 0)))
        args.append(residual)
    out, s, q = pl.pallas_call(
        kernel,
        out_shape=(jax.ShapeDtypeStruct((M, Cout), jnp.float32),
                   jax.ShapeDtypeStruct((n_tiles, 1, Cout), jnp.float32),
                   jax.ShapeDtypeStruct((n_tiles, 1, Cout), jnp.float32)),
        grid=(n_tiles,),
        in_specs=in_specs,
        out_specs=(pl.BlockSpec((TM, Cout), lambda i: (i, 0)),
                   pl.BlockSpec((1, 1, Cout), lambda i: (i, 0, 0)),
                   pl.BlockSpec((1, 1, Cout), lambda i: (i, 0, 0))),
        compiler_params=pltpu.CompilerParams(
            dimension_semantics=("parallel",),                 # shards tiles across v7x's 2 TCs
            vmem_limit_bytes=FUSED_VMEM_LIMIT),                # budgeted for v7x 64 MiB/TC
    )(*args)
    return out, (jnp.sum(s, axis=(0, 1)), jnp.sum(q, axis=(0, 1)))


# One-time probe: if the in-kernel gather does not lower on this Mosaic build,
# fall back permanently to the XLA-gather path (still padded/cast-free + fused stats).
_FUSED_GATHER_STATE = {"ok": None}


def subm_conv_bn_relu(x, stats, nbr_idx, gamma, beta, w3, nv_arr, residual=None):
    """norm_fn -> ReLU -> SubMConv3d(kernel=3) with fused residual + output stats."""
    scale, shift = bn_scale_shift(stats, gamma, beta, nv_arr)
    st = _FUSED_GATHER_STATE
    if st["ok"] is not False and x.size * x.dtype.itemsize <= FUSED_TABLE_BYTES:
        try:
            res = _fused_subm_call(nv_arr, x, nbr_idx, scale, shift, w3, residual)
            if st["ok"] is None:
                jax.block_until_ready(res)
                st["ok"] = True
            return res
        except Exception:
            st["ok"] = False
    # Fallback: standalone BN+ReLU (bf16 out) -> XLA row gather -> folded GEMM(+res,+stats).
    # TODO(synk): for feature tables beyond the VMEM budget, a manual-DMA gather
    # (scalar-prefetched indices + double-buffered row DMAs) would replace this.
    xb = bn_relu_apply(x, scale, shift, nv_arr)
    M, Cin = x.shape
    K = nbr_idx.shape[1]
    g = xb[nbr_idx].reshape(M, K * Cin)
    return gemm_stats(g, w3.reshape(K * Cin, w3.shape[2]), residual)


# ----------------------------------------------------------------------------
# Host-side rulebook construction (spconv's index-building custom op), vectorized
# ----------------------------------------------------------------------------
OFFSETS_27 = np.array(list(product([-1, 0, 1], repeat=3)), dtype=np.int64)  # 3x3x3 subm kernel


def build_subm_rulebook(coords_np, n_valid, spatial_shape, M):
    """Neighbor table for SubMConv3d(kernel=3): nbr_idx[m, k].

    Invalid neighbours (and all padded rows m >= n_valid) point at row n_valid,
    a guaranteed all-zero padded row (kernels additionally mask idx >= n_valid).
    Fully vectorized (sorted-key searchsorted join) -- no Python dict/double loop.
    """
    zero_row = n_valid                       # exists because M = pad_to(n_valid + 1, TM)
    c = coords_np[:n_valid].astype(np.int64)
    D = int(max(spatial_shape)) + 4

    def key_of(a):
        return ((a[:, 0] * D + a[:, 1]) * D + a[:, 2]) * D + a[:, 3]

    keys = key_of(c)
    order = np.argsort(keys, kind="stable")
    skeys = keys[order]
    K = OFFSETS_27.shape[0]
    nbr_idx = np.full((M, K), zero_row, dtype=np.int32)
    for k, (dz, dy, dx) in enumerate(OFFSETS_27):
        nc = c.copy()
        nc[:, 1] += dz
        nc[:, 2] += dy
        nc[:, 3] += dx
        inb = ((nc[:, 1] >= 0) & (nc[:, 1] < spatial_shape[0]) &
               (nc[:, 2] >= 0) & (nc[:, 2] < spatial_shape[1]) &
               (nc[:, 3] >= 0) & (nc[:, 3] < spatial_shape[2]))
        nk = key_of(nc)
        pos = np.minimum(np.searchsorted(skeys, nk), n_valid - 1)
        hit = inb & (skeys[pos] == nk)
        nbr_idx[:n_valid, k] = np.where(hit, order[pos], zero_row).astype(np.int32)
    return nbr_idx


def build_down_rulebook(coords_np, n_valid):
    """Rulebook for SparseConv3d(kernel=2, stride=2) and its inverse conv."""
    c = coords_np[:n_valid].astype(np.int64)
    parent = np.stack([c[:, 0], c[:, 1] // 2, c[:, 2] // 2, c[:, 3] // 2], axis=1)
    uniq, inv = np.unique(parent, axis=0, return_inverse=True)
    inv = inv.reshape(-1)
    n_next = uniq.shape[0]
    offset = (c[:, 1] % 2) * 4 + (c[:, 2] % 2) * 2 + (c[:, 3] % 2)
    m_next = pad_to(n_next + 1, TM)          # keep >= 1 guaranteed-zero padded row
    coords_next = np.full((m_next, 4), -1, dtype=np.int32)
    coords_next[:n_next] = uniq.astype(np.int32)
    return coords_next, n_next, inv.astype(np.int32), offset.astype(np.int32)


# ----------------------------------------------------------------------------
# Sparse conv layers that keep their data-dependent scatter in XLA
# ----------------------------------------------------------------------------
def sparse_conv_down(x_bn16, parent_idx, offset_idx, n_valid, m_next, w3):
    # SparseConv3d(kernel=2, stride=2): scatter child features into (parent, offset)
    # slots (XLA glue, bf16), then one folded GEMM with stats epilogue.
    Cin, Cout = w3.shape[1], w3.shape[2]
    g = jnp.zeros((m_next, 8, Cin), jnp.bfloat16)
    g = g.at[parent_idx, offset_idx].set(x_bn16[:n_valid])
    return gemm_stats(g.reshape(m_next, 8 * Cin), w3.reshape(8 * Cin, Cout))


def sparse_inverse_conv(y_bn16, parent_idx, offset_idx, n_valid_fine, m_fine, w3):
    # SparseInverseConv3d(kernel=2) reusing the stride-2 rulebook.
    Cin, Cout = w3.shape[1], w3.shape[2]
    g = jnp.zeros((m_fine, 8, Cin), jnp.bfloat16)
    g = g.at[jnp.arange(n_valid_fine), offset_idx].set(y_bn16[parent_idx])
    return gemm_stats(g.reshape(m_fine, 8 * Cin), w3.reshape(8 * Cin, Cout))


def get_downsample_info(xyz, batch, pair_in, pair_out, num_out):
    # scatter_mean over valid pairs (all pairs are valid for this stride-2 rulebook)
    cnt = jax.ops.segment_sum(jnp.ones_like(batch, jnp.float32), pair_out,
                              num_segments=num_out)
    xyz_next = jax.ops.segment_sum(xyz[pair_in], pair_out, num_segments=num_out) / cnt[:, None]
    batch_next = jax.ops.segment_sum(batch[pair_in].astype(jnp.float32), pair_out,
                                     num_segments=num_out) / cnt
    return xyz_next, batch_next


# ----------------------------------------------------------------------------
# Parameters (deterministic synthetic init)
# ----------------------------------------------------------------------------
def _winit(key, shape, fan_in):
    return (jax.random.normal(key, shape, jnp.float32) / np.sqrt(fan_in)).astype(jnp.float32)


def init_resblock(key, cin, cout):
    ks = jax.random.split(key, 6)
    p = {
        "bn1_g": jnp.ones((cin,), jnp.float32) + 0.01 * jax.random.normal(ks[0], (cin,)),
        "bn1_b": 0.01 * jax.random.normal(ks[1], (cin,)),
        "conv1_w": _winit(ks[2], (27, cin, cout), 27 * cin).astype(jnp.bfloat16),
        "bn2_g": jnp.ones((cout,), jnp.float32) + 0.01 * jax.random.normal(ks[3], (cout,)),
        "bn2_b": 0.01 * jax.random.normal(ks[4], (cout,)),
        "conv2_w": _winit(ks[5], (27, cout, cout), 27 * cout).astype(jnp.bfloat16),
    }
    if cin != cout:
        p["i_w"] = _winit(jax.random.fold_in(key, 99), (cin, cout), cin).astype(jnp.bfloat16)
    return p


def init_ublock(key, nPlanes, block_reps):
    c0 = nPlanes[0]
    p = {"blocks": [init_resblock(jax.random.fold_in(key, i), c0, c0)
                    for i in range(block_reps)]}
    if len(nPlanes) > 1:
        c1 = nPlanes[1]
        p["conv_bn_g"] = jnp.ones((c0,), jnp.float32)
        p["conv_bn_b"] = jnp.zeros((c0,), jnp.float32)
        p["conv_w"] = _winit(jax.random.fold_in(key, 100), (8, c0, c1), 8 * c0).astype(jnp.bfloat16)
        p["u"] = init_ublock(jax.random.fold_in(key, 101), nPlanes[1:], block_reps)
        p["deconv_bn_g"] = jnp.ones((c1,), jnp.float32)
        p["deconv_bn_b"] = jnp.zeros((c1,), jnp.float32)
        p["deconv_w"] = _winit(jax.random.fold_in(key, 102), (8, c1, c0), 8 * c1).astype(jnp.bfloat16)
        p["blocks_tail"] = [init_resblock(jax.random.fold_in(key, 200 + i),
                                          c0 * (2 - i), c0) for i in range(block_reps)]
    return p


# ----------------------------------------------------------------------------
# Module forward
# ----------------------------------------------------------------------------
def resblock_forward(p, feats, stats, nbr_idx, nv_arr):
    if "i_w" in p:
        identity, _ = gemm_stats(feats, p["i_w"])          # SubMConv3d(kernel=1) on the raw input
    else:
        identity = feats
    x, stats1 = subm_conv_bn_relu(feats, stats, nbr_idx, p["bn1_g"], p["bn1_b"],
                                  p["conv1_w"], nv_arr)
    # residual add fused into the second conv's epilogue
    return subm_conv_bn_relu(x, stats1, nbr_idx, p["bn2_g"], p["bn2_b"],
                             p["conv2_w"], nv_arr, residual=identity)


def ublock_forward(p, feats, stats, coords_np, n_valid, xyz, batch_np, nPlanes,
                   spatial_shape, indice_key_id=1, unet_layers=(1, 2, 3, 4, 5)):
    # assert (inp.indices[:, 0] == batch).all()
    assert np.all(coords_np[:n_valid, 0] == np.asarray(batch_np)[:n_valid])

    M = feats.shape[0]
    nv_arr = jnp.array([n_valid], jnp.int32)
    nbr_idx = jnp.asarray(build_subm_rulebook(coords_np, n_valid, spatial_shape, M))

    out = feats
    for bp in p["blocks"]:
        out, stats = resblock_forward(bp, out, stats, nbr_idx, nv_arr)

    if indice_key_id in unet_layers:
        # TODO(synk): ResFBlock (focal modulation block) definition not provided upstream;
        # treated as identity here.
        pass

    identity, id_stats = out, stats
    if len(nPlanes) > 1:
        # self.conv = norm_fn -> ReLU -> SparseConv3d(k=2, s=2, bias=False)
        scale, shift = bn_scale_shift(stats, p["conv_bn_g"], p["conv_bn_b"], nv_arr)
        xb = bn_relu_apply(out, scale, shift, nv_arr)
        coords_next_np, n_next, parent_np, offset_np = build_down_rulebook(coords_np, n_valid)
        parent_idx, offset_idx = jnp.asarray(parent_np), jnp.asarray(offset_np)
        m_next = coords_next_np.shape[0]
        x_down, down_stats = sparse_conv_down(xb, parent_idx, offset_idx, n_valid, m_next,
                                              p["conv_w"])

        # get_downsample_info (scatter_mean of xyz / batch over the indice pairs)
        pair_in = jnp.arange(n_valid)
        xyz_next, batch_next = get_downsample_info(
            xyz[:n_valid], jnp.asarray(batch_np[:n_valid]), pair_in, parent_idx, n_next)
        xyz_next = jnp.concatenate(
            [xyz_next, jnp.zeros((m_next - n_next, 3), jnp.float32)], axis=0)
        batch_next_np = np.full((m_next,), -1, np.int32)
        batch_next_np[:n_next] = np.rint(np.asarray(batch_next)).astype(np.int64)  # .long()

        spatial_next = tuple((s + 1) // 2 for s in spatial_shape)
        x_u, u_stats = ublock_forward(p["u"], x_down, down_stats, coords_next_np, n_next,
                                      xyz_next, batch_next_np, nPlanes[1:], spatial_next,
                                      indice_key_id + 1, unet_layers)

        # self.deconv = norm_fn -> ReLU -> SparseInverseConv3d(k=2, bias=False)
        nv_next = jnp.array([n_next], jnp.int32)
        dscale, dshift = bn_scale_shift(u_stats, p["deconv_bn_g"], p["deconv_bn_b"], nv_next)
        yb = bn_relu_apply(x_u, dscale, dshift, nv_next)
        y_up, up_stats = sparse_inverse_conv(yb, parent_idx, offset_idx, n_valid, M,
                                             p["deconv_w"])

        # cat((identity, decoder), dim=1); channel stats concatenate likewise
        out = jnp.concatenate([identity, y_up], axis=1)
        stats = (jnp.concatenate([id_stats[0], up_stats[0]]),
                 jnp.concatenate([id_stats[1], up_stats[1]]))
        for bp in p["blocks_tail"]:
            out, stats = resblock_forward(bp, out, stats, nbr_idx, nv_arr)
    return out, stats


# ----------------------------------------------------------------------------
if __name__ == "__main__":
    key = jax.random.PRNGKey(0)
    kc, kf, kx, kp = jax.random.split(key, 4)

    # Small deterministic sparse voxel problem: 2 batches, 8^3 grid, 40 voxels each.
    batch_size, S, pts_per_batch = 2, 8, 40
    nPlanes = [16, 32]
    block_reps = 2

    coords_list = []
    for b in range(batch_size):
        perm = np.asarray(jax.random.permutation(jax.random.fold_in(kc, b), S * S * S))[:pts_per_batch]
        z, y, x = np.unravel_index(perm, (S, S, S))
        cb = np.stack([np.full_like(z, b), z, y, x], axis=1).astype(np.int32)
        coords_list.append(cb)
    coords_np = np.concatenate(coords_list, axis=0)        # [80, 4]
    n_valid = coords_np.shape[0]
    M = pad_to(n_valid + 1, TM)                            # 512 (>= n_valid + 1 zero row)
    coords_pad = np.full((M, 4), -1, np.int32)
    coords_pad[:n_valid] = coords_np

    valid = jnp.asarray((np.arange(M) < n_valid).astype(np.float32))[:, None]
    feats = jax.random.normal(kf, (M, nPlanes[0]), jnp.float32) * valid
    xyz = jnp.asarray(coords_pad[:, 1:].astype(np.float32)) + \
        0.1 * jax.random.normal(kx, (M, 3), jnp.float32)
    batch_np = coords_pad[:, 0].copy()

    params = init_ublock(kp, nPlanes, block_reps)

    nv_arr0 = jnp.array([n_valid], jnp.int32)
    stats0 = bn_stats(feats, nv_arr0)                      # the only standalone stats pass
    out, _ = ublock_forward(params, feats, stats0, coords_pad, n_valid, xyz, batch_np,
                            nPlanes, (S, S, S), indice_key_id=1, unet_layers=(1, 2, 3, 4, 5))
    out = jax.block_until_ready(out)
    assert out.shape == (M, nPlanes[0]) and bool(jnp.all(jnp.isfinite(out)))
    print("KERNEL_OK")
</pallas_src>

<mosaic_0001>
module attributes {stable_mosaic.version = 11 : i64} {
  func.func @_stats_kernel(%arg0: i32, %arg1: memref<1xi32, #tpu.memory_space<smem>>, %arg2: memref<64x128xf32, #tpu.memory_space<vmem>>, %arg3: memref<1x1x128xf32, #tpu.memory_space<vmem>>, %arg4: memref<1x1x128xf32, #tpu.memory_space<vmem>>) attributes {dimension_semantics = [#tpu.dimension_semantics<parallel>], iteration_bounds = array<i64: 1>, scalar_prefetch = 0 : i64, scratch_operands = 0 : i64, tpu.core_type = #tpu.core_type<tc>, window_params = [{transform_indices = @transform_0, window_bounds = array<i64: 1>}, {transform_indices = @transform_1, window_bounds = array<i64: 64, 128>}, {transform_indices = @transform_2, window_bounds = array<i64: 1, 1, 128>}, {transform_indices = @transform_3, window_bounds = array<i64: 1, 1, 128>}]} {
    %c64_i32 = arith.constant 64 : i32
    %0 = arith.muli %arg0, %c64_i32 : i32
    %1 = tpu.iota {dimensions = array<i32: 0>} : vector<64x128xi32>
    %2 = vector.broadcast %0 : i32 to vector<64x128xi32>
    %3 = arith.addi %1, %2 : vector<64x128xi32>
    %c128_i32 = arith.constant 128 : i32
    %4 = vector.broadcast %c128_i32 : i32 to vector<64x128xi32>
    %5 = arith.muli %3, %4 : vector<64x128xi32>
    %6 = tpu.iota {dimensions = array<i32: 1>} : vector<64x128xi32>
    %7 = arith.addi %5, %6 : vector<64x128xi32>
    %c0 = arith.constant 0 : index
    %8 = memref.load %arg1[%c0] : memref<1xi32, #tpu.memory_space<smem>>
    %c16_i32 = arith.constant 16 : i32
    %9 = arith.muli %8, %c16_i32 : i32
    %10 = vector.broadcast %9 : i32 to vector<64x128xi32>
    %11 = arith.cmpi slt, %7, %10 : vector<64x128xi32>
    %c0_0 = arith.constant 0 : index
    %c0_1 = arith.constant 0 : index
    %12 = vector.load %arg2[%c0_0, %c0_1] : memref<64x128xf32, #tpu.memory_space<vmem>>, vector<64x128xf32>
    %cst = arith.constant 0.000000e+00 : f32
    %13 = vector.broadcast %cst : f32 to vector<64x128xf32>
    %14 = arith.select %11, %12, %13 : vector<64x128xi1>, vector<64x128xf32>
    %cst_2 = arith.constant dense<0.000000e+00> : vector<128xf32>
    %15 = vector.multi_reduction <add>, %14, %cst_2 [0] : vector<64x128xf32> to vector<128xf32>
    %16 = vector.shape_cast %15 : vector<128xf32> to vector<1x128xf32>
    %17 = vector.shape_cast %16 : vector<1x128xf32> to vector<1x1x128xf32>
    %c0_3 = arith.constant 0 : index
    %c0_4 = arith.constant 0 : index
    %c0_5 = arith.constant 0 : index
    %18 = vector.load %arg3[%c0_3, %c0_4, %c0_5] : memref<1x1x128xf32, #tpu.memory_space<vmem>>, vector<1x1x128xf32>
    tpu.vector_store %arg3[%c0_3, %c0_4, %c0_5], %17 {strides = array<i32>} : memref<1x1x128xf32, #tpu.memory_space<vmem>>, vector<1x1x128xf32>,
    %19 = arith.mulf %14, %14 : vector<64x128xf32>
    %cst_6 = arith.constant dense<0.000000e+00> : vector<128xf32>
    %20 = vector.multi_reduction <add>, %19, %cst_6 [0] : vector<64x128xf32> to vector<128xf32>
    %21 = vector.shape_cast %20 : vector<128xf32> to vector<1x128xf32>
    %22 = vector.shape_cast %21 : vector<1x128xf32> to vector<1x1x128xf32>
    %c0_7 = arith.constant 0 : index
    %c0_8 = arith.constant 0 : index
    %c0_9 = arith.constant 0 : index
    %23 = vector.load %arg4[%c0_7, %c0_8, %c0_9] : memref<1x1x128xf32, #tpu.memory_space<vmem>>, vector<1x1x128xf32>
    tpu.vector_store %arg4[%c0_7, %c0_8, %c0_9], %22 {strides = array<i32>} : memref<1x1x128xf32, #tpu.memory_space<vmem>>, vector<1x1x128xf32>,
    return
  }
  func.func @transform_0(%arg0: i32) -> i32 {
    %c0_i32 = arith.constant 0 : i32
    %c0_i32_0 = arith.constant 0 : i32
    return %c0_i32 : i32
  }
  func.func @transform_1(%arg0: i32) -> (i32, i32) {
    %c0_i32 = arith.constant 0 : i32
    %c0_i32_0 = arith.constant 0 : i32
    return %arg0, %c0_i32 : i32, i32
  }
  func.func @transform_2(%arg0: i32) -> (i32, i32, i32) {
    %c0_i32 = arith.constant 0 : i32
    %c0_i32_0 = arith.constant 0 : i32
    %c0_i32_1 = arith.constant 0 : i32
    return %arg0, %c0_i32, %c0_i32_0 : i32, i32, i32
  }
  func.func @transform_3(%arg0: i32) -> (i32, i32, i32) {
    %c0_i32 = arith.constant 0 : i32
    %c0_i32_0 = arith.constant 0 : i32
    %c0_i32_1 = arith.constant 0 : i32
    return %arg0, %c0_i32, %c0_i32_0 : i32, i32, i32
  }
}

</mosaic_0001>

<bundles_post_ra>
// kernel: bn_stats.1
= control target key start
LH: loop header
LB: loop body
LE: loop exit
PB: predicated region body
PF: predicated region fallthrough
CT: control target
= control target key end

     0   :  { %v15_v0 = vlaneseq  ;;  %s176_s0 = inlined_call_operand.<no memory space> [shape: s32[1], index: 0, kind: input, shape index: {}]   ;;  %s177_s1 = inlined_call_operand.vmem [shape: f32[64,128], index: 1, kind: input, shape index: {}]   ;;  %s178_s2 = inlined_call_operand.vmem [shape: f32[1,1,128], index: 2, kind: output, shape index: {0}]   ;;  %s179_s3 = inlined_call_operand.vmem [shape: f32[1,1,128], index: 3, kind: output, shape index: {1}]  }
   0x1   :  { %s122_s14 = sshll.u32 %s176_s0, 4  ;;  %v62_v20 = vld [vmem:[%s177_s1] sm:$0xff]  ;;  %v63_v24 = vld [vmem:[%s177_s1 + $0x8] sm:$0xff]  ;;  %v64_v25 = vld [vmem:[%s177_s1 + $0x10] sm:$0xff] }
   0x2   :  { %v16_v1 = vshrl.u32 %v15_v0, 7  ;;  %v42_v2 = vand.u32 127, %v15_v0  ;;  %v53_v12 = vstv %s122_s14  ;;  %v65_v28 = vld [vmem:[%s177_s1 + $0x18] sm:$0xff]  ;;  %v66_v33 = vld [vmem:[%s177_s1 + $0x20] sm:$0xff]  ;;  %v67_v38 = vld [vmem:[%s177_s1 + $0x28] sm:$0xff] }
   0x3   :  { %v68_v43 = vld [vmem:[%s177_s1 + $0x30] sm:$0xff]  ;;  %v69_v48 = vld [vmem:[%s177_s1 + $0x38] sm:$0xff] }
   0x4   :  { %v17_v3 = vadd.s32 8, %v16_v1  ;;  %v18_v4 = vadd.s32 16, %v16_v1  ;;  %v19_v5 = vadd.s32 24, %v16_v1  ;;  %v20_v6 = vadd.s32 32, %v16_v1 }
   0x5   :  { %v21_v7 = vadd.s32 40, %v16_v1  ;;  %v22_v8 = vadd.s32 48, %v16_v1  ;;  %v33_v9 = vmul.u32 128, %v16_v1  ;;  %v23_v13 = vadd.s32 56, %v16_v1 }
   0x6   :  { %v34_v10 = vmul.u32 128, %v17_v3  ;;  %v35_v11 = vmul.u32 128, %v18_v4 }
   0x7   :  { %v36_v14 = vmul.u32 128, %v19_v5  ;;  %v37_v15 = vmul.u32 128, %v20_v6  ;;  %v43_v16 = vadd.s32 %v42_v2, %v33_v9 }
   0x8   :  { %v38_v17 = vmul.u32 128, %v21_v7  ;;  %v44_v18 = vadd.s32 %v42_v2, %v34_v10  ;;  %v45_v19 = vadd.s32 %v42_v2, %v35_v11  ;;  %v39_v21 = vmul.u32 128, %v22_v8 }
   0x9   :  { %v46_v22 = vadd.s32 %v42_v2, %v36_v14  ;;  %v47_v23 = vadd.s32 %v42_v2, %v37_v15  ;;  %vm54_vm0 = vcmp.lt.s32.totalorder %v43_v16, %v53_v12  ;;  %v40_v26 = vmul.u32 128, %v23_v13 }
   0xa   :  { %vm55_vm1 = vcmp.lt.s32.totalorder %v44_v18, %v53_v12  ;;  %vm56_vm2 = vcmp.lt.s32.totalorder %v45_v19, %v53_v12  ;;  %v48_v27 = vadd.s32 %v42_v2, %v38_v17  ;;  %v70_v29 = vsel %vm54_vm0, %v62_v20, 0.0 }
   0xb   :  { %vm57_vm3 = vcmp.lt.s32.totalorder %v46_v22, %v53_v12  ;;  %v71_v30 = vsel %vm55_vm1, %v63_v24, 0.0  ;;  %v72_v31 = vsel %vm56_vm2, %v64_v25, 0.0  ;;  %v49_v32 = vadd.s32 %v42_v2, %v39_v21 }
   0xc   :  { %vm58_vm4 = vcmp.lt.s32.totalorder %v47_v23, %v53_v12  ;;  %v73_v34 = vsel %vm57_vm3, %v65_v28, 0.0  ;;  %v78_v35 = vadd.f32 %v71_v30, %v70_v29  ;;  %v92_v36 = vmul.f32 %v70_v29, %v70_v29 }
   0xd   :  { %v50_v37 = vadd.s32 %v42_v2, %v40_v26  ;;  %vm59_vm5 = vcmp.lt.s32.totalorder %v48_v27, %v53_v12  ;;  %v93_v39 = vmul.f32 %v71_v30, %v71_v30  ;;  %v94_v40 = vmul.f32 %v72_v31, %v72_v31 }
   0xe   :  { %v74_v41 = vsel %vm58_vm4, %v66_v33, 0.0  ;;  %v79_v42 = vadd.f32 %v78_v35, %v72_v31  ;;  %vm60_vm6 = vcmp.lt.s32.totalorder %v49_v32, %v53_v12  ;;  %v95_v44 = vmul.f32 %v73_v34, %v73_v34 }
   0xf   :  { %v100_v45 = vadd.f32 %v93_v39, %v92_v36  ;;  %v75_v46 = vsel %vm59_vm5, %v67_v38, 0.0  ;;  %vm61_vm7 = vcmp.lt.s32.totalorder %v50_v37, %v53_v12  ;;  %v96_v49 = vmul.f32 %v74_v41, %v74_v41 }
  0x10   :  { %v80_v47 = vadd.f32 %v79_v42, %v73_v34  ;;  %v76_v51 = vsel %vm60_vm6, %v68_v43, 0.0  ;;  %v97_v53 = vmul.f32 %v75_v46, %v75_v46  ;;  %v77_v55 = vsel %vm61_vm7, %v69_v48, 0.0 }
  0x11   :  { %v101_v50 = vadd.f32 %v100_v45, %v94_v40  ;;  %v98_v57 = vmul.f32 %v76_v51, %v76_v51  ;;  %v99_v60 = vmul.f32 %v77_v55, %v77_v55 }
  0x12   :  { %v81_v52 = vadd.f32 %v80_v47, %v74_v41 }
  0x13   :  { %v102_v54 = vadd.f32 %v101_v50, %v95_v44 }
  0x14   :  { %v82_v56 = vadd.f32 %v81_v52, %v75_v46 }
  0x15   :  { %v103_v58 = vadd.f32 %v102_v54, %v96_v49 }
  0x16   :  { %v83_v59 = vadd.f32 %v82_v56, %v76_v51 }
  0x17   :  { %v104_v61 = vadd.f32 %v103_v58, %v97_v53 }
  0x18   :  { %v84_v62 = vadd.f32 %v83_v59, %v77_v55 }
  0x19   :  { %v105_v63 = vadd.f32 %v104_v61, %v98_v57 }
  0x1a   :  { %v85_v0 = vrot.slane %v84_v62, 4 }
  0x1b   :  { %v106_v1 = vadd.f32 %v105_v63, %v99_v60 }
  0x1c   :  { %v86_v2 = vadd.f32 %v85_v0, %v84_v62 }
  0x1d   :  { %v107_v3 = vrot.slane %v106_v1, 4 }
  0x1e   :  { %v87_v4 = vrot.slane %v86_v2, 2 }
  0x1f   :  { %v108_v5 = vadd.f32 %v107_v3, %v106_v1 }
  0x20   :  { %v88_v6 = vadd.f32 %v87_v4, %v86_v2 }
  0x21   :  { %v109_v7 = vrot.slane %v108_v5, 2 }
  0x22   :  { %v89_v8 = vrot.slane %v88_v6, 1 }
  0x23   :  { %v110_v9 = vadd.f32 %v109_v7, %v108_v5 }
  0x24   :  { %v90_v10 = vadd.f32 %v89_v8, %v88_v6 }
  0x25   :  { %v111_v11 = vrot.slane %v110_v9, 1 }
  0x26   :  { %91 = vst [vmem:[%s178_s2] sm:$0x1] %v90_v10 }
  0x27   :  { %v112_v12 = vadd.f32 %v111_v11, %v110_v9 }
  0x29   :  { %113 = vst [vmem:[%s179_s3] sm:$0x1] %v112_v12 }

</bundles_post_ra>
